<compile_context>
chip_gen: v7x
topology: tpu7x:2x2x1
jax: 0.10.0
libtpu: 0.0.40
codegen_flags: <defaults>
</compile_context>

<pallas_src>
import jax
import jax.numpy as jnp
from jax import lax
from jax.experimental import pallas as pl
from jax.experimental.pallas import tpu as pltpu


def _round_up(a, b):
    return ((a + b - 1) // b) * b


def _vmem_capacity_bytes():
    """Physical VMEM per core (64 MiB on v7x, 128 MiB on v5e/v6e); safe fallback."""
    try:
        info = pltpu.get_tpu_info()
        for attr in ("vmem_capacity_bytes", "vmem_bytes", "vmem_size_bytes"):
            v = getattr(info, attr, None)
            if v:
                return int(v)
    except Exception:
        pass
    return 64 * 1024 * 1024  # conservative: v7x


# ---------------------------------------------------------------------------
# Fused single-pass kernel: the whole per-batch (C, N) slab is resident, so X
# is read from HBM once and the attention matrix never touches HBM.
# ---------------------------------------------------------------------------
def _cam_fused_kernel(gamma_ref, x_ref, o_ref):
    x = x_ref[...]                                   # (C, N), native dtype
    # energy = X @ X^T: contract last axes of both operands (no transpose copy).
    energy = lax.dot_general(
        x, x, dimension_numbers=(((1,), (1,)), ((), ())),
        preferred_element_type=jnp.float32,
    )
    # softmax(rowmax - energy) == softmax(rowmin - energy): shift-invariant per
    # row, and rowmin - energy has per-row max 0, so it is already stabilized.
    e = jnp.exp(jnp.min(energy, axis=-1, keepdims=True) - energy)
    inv = pl.reciprocal(jnp.sum(e, axis=-1, keepdims=True), approx=True)
    # Fold gamma into the (C, C) attention once; feed the MXU in x's dtype.
    attn = (gamma_ref[0] * (e * inv)).astype(x.dtype)
    out = jnp.dot(attn, x, preferred_element_type=jnp.float32)
    o_ref[...] = (out + x.astype(jnp.float32)).astype(o_ref.dtype)


# ---------------------------------------------------------------------------
# Two-pass (N-tiled) fallback for slabs that do not fit VMEM.
# ---------------------------------------------------------------------------
def _make_attn_kernel(n_total, tile_n, ragged):
    """Pass 1: accumulate energy = X @ X^T over N tiles; softmax + gamma fold."""

    def kernel(gamma_ref, x_ref, attn_ref, energy_ref):
        n = pl.program_id(1)
        nt = pl.num_programs(1)

        @pl.when(n == 0)
        def _():
            energy_ref[...] = jnp.zeros_like(energy_ref)

        x = x_ref[...]                               # (C, tile_n), native dtype

        def accumulate(xv):
            energy_ref[...] += lax.dot_general(
                xv, xv, dimension_numbers=(((1,), (1,)), ((), ())),
                preferred_element_type=jnp.float32,
            )

        if ragged:
            # Only the final (partial) tile pays the masking cost; all other
            # tiles take the plain MXU path.
            @pl.when(n != nt - 1)
            def _():
                accumulate(x)

            @pl.when(n == nt - 1)
            def _():
                col = n * tile_n + lax.broadcasted_iota(jnp.int32, x.shape, 1)
                accumulate(jnp.where(col < n_total, x, jnp.zeros_like(x)))
        else:
            accumulate(x)

        @pl.when(n == nt - 1)
        def _():
            energy = energy_ref[...]
            e = jnp.exp(jnp.min(energy, axis=-1, keepdims=True) - energy)
            inv = pl.reciprocal(jnp.sum(e, axis=-1, keepdims=True), approx=True)
            # gamma folded here, emitted in the input dtype: pass 2 needs no
            # per-tile cast and no per-tile scaling.
            attn_ref[...] = (gamma_ref[0] * (e * inv)).astype(attn_ref.dtype)

    return kernel


def _cam_apply_kernel(attn_ref, x_ref, o_ref):
    """Pass 2: out_tile = attn @ X_tile + X_tile (gamma already inside attn)."""
    x = x_ref[...]
    out = jnp.dot(attn_ref[...], x, preferred_element_type=jnp.float32)
    o_ref[...] = (out + x.astype(jnp.float32)).astype(o_ref.dtype)


def cam_forward(x, gamma, *, tile_n=None, fuse=None):
    """CAM forward. x: (B, C, H, W), gamma: scalar (Scale(0) parameter).

    fuse=None auto-selects the fused single-pass kernel when the per-batch
    (C, H*W) slab fits the VMEM budget; fuse=True/False forces the choice.
    Passing tile_n forces the two-pass path with that spatial tile.
    """
    B, C, H, W = x.shape
    N = H * W
    x_flat = x.reshape(B, C, N)
    itemsize = jnp.dtype(x.dtype).itemsize
    gamma_arr = jnp.asarray(gamma, dtype=jnp.float32).reshape(1)

    vmem_cap = _vmem_capacity_bytes()
    budget = int(0.8 * vmem_cap)     # ~51 MiB on v7x, ~102 MiB on v5e/v6e

    # Fused-path footprint: double-buffered in + out slabs + (C, C) temporaries.
    fused_est = 4 * C * N * itemsize + 4 * C * C * 4 + (2 << 20)
    if fuse is None:
        use_fused = (tile_n is None) and (fused_est <= budget)
    else:
        use_fused = bool(fuse)

    if use_fused:
        out_flat = pl.pallas_call(
            _cam_fused_kernel,
            out_shape=jax.ShapeDtypeStruct((B, C, N), x.dtype),
            grid_spec=pltpu.PrefetchScalarGridSpec(
                num_scalar_prefetch=1,
                grid=(B,),
                in_specs=[
                    pl.BlockSpec((pl.Squeezed(), C, N), lambda b, g: (b, 0, 0)),
                ],
                out_specs=pl.BlockSpec((pl.Squeezed(), C, N),
                                       lambda b, g: (b, 0, 0)),
            ),
            compiler_params=pltpu.CompilerParams(
                dimension_semantics=("parallel",),
                vmem_limit_bytes=budget,
            ),
        )(gamma_arr, x_flat)
        return out_flat.reshape(B, C, H, W)

    # ---------------- Two-pass (N-tiled) fallback ----------------
    # Tile size: largest lane-dense multiple of 128 whose per-step footprint
    # (2 in + 2 out tiles + attn buffers + energy scratch) fits the budget.
    if tile_n is None:
        fixed = 3 * C * C * 4 + 3 * C * C * itemsize + (2 << 20)
        per_col = 4 * C * itemsize
        tn = max(budget - fixed, per_col * 128) // per_col
        tn = int((tn // 128) * 128)
        tn = max(128, min(tn, 8192))
    else:
        tn = max(128, _round_up(int(tile_n), 128))

    if tn >= N:
        tn, nt, ragged = N, 1, False     # one full-extent tile (always legal)
    else:
        nt = -(-N // tn)
        ragged = (N % tn) != 0

    # Pass 1: per-batch (C, C) channel attention (gamma folded, input dtype).
    attn = pl.pallas_call(
        _make_attn_kernel(N, tn, ragged),
        out_shape=jax.ShapeDtypeStruct((B, C, C), x.dtype),
        grid_spec=pltpu.PrefetchScalarGridSpec(
            num_scalar_prefetch=1,
            grid=(B, nt),
            in_specs=[
                pl.BlockSpec((pl.Squeezed(), C, tn), lambda b, n, g: (b, 0, n)),
            ],
            out_specs=pl.BlockSpec((pl.Squeezed(), C, C),
                                   lambda b, n, g: (b, 0, 0)),
            scratch_shapes=[pltpu.VMEM((C, C), jnp.float32)],
        ),
        compiler_params=pltpu.CompilerParams(
            dimension_semantics=("parallel", "arbitrary"),
            vmem_limit_bytes=budget,
        ),
    )(gamma_arr, x_flat)
    # TODO(synk): on v7x with B == 1 this gram pass runs on one TensorCore; a
    # split-reduction over a leading size-2 parallel axis would engage both.

    # Pass 2: out = attn @ X + X, streamed over N tiles. Out-of-bounds columns
    # of the ragged final tile are dropped by Pallas on writeback.
    out_flat = pl.pallas_call(
        _cam_apply_kernel,
        out_shape=jax.ShapeDtypeStruct((B, C, N), x.dtype),
        grid_spec=pltpu.PrefetchScalarGridSpec(
            num_scalar_prefetch=0,
            grid=(B, nt),
            in_specs=[
                pl.BlockSpec((pl.Squeezed(), C, C), lambda b, n: (b, 0, 0)),
                pl.BlockSpec((pl.Squeezed(), C, tn), lambda b, n: (b, 0, n)),
            ],
            out_specs=pl.BlockSpec((pl.Squeezed(), C, tn),
                                   lambda b, n: (b, 0, n)),
        ),
        compiler_params=pltpu.CompilerParams(
            dimension_semantics=("parallel", "parallel"),
            vmem_limit_bytes=budget,
        ),
    )(attn, x_flat)

    return out_flat.reshape(B, C, H, W)


def cam_reference(x, gamma):
    """Plain-JAX reference matching the PyTorch forward exactly."""
    B, C, H, W = x.shape
    q = x.reshape(B, C, -1)                                    # (B, C, N)
    k = jnp.transpose(q, (0, 2, 1))                            # (B, N, C)
    energy = jnp.einsum("bcn,bnd->bcd", q, k)                  # (B, C, C)
    energy_new = jnp.max(energy, axis=-1, keepdims=True) - energy
    attn = jax.nn.softmax(energy_new, axis=-1)
    out = jnp.einsum("bcd,bdn->bcn", attn, q).reshape(B, C, H, W)
    return gamma * out + x


if __name__ == "__main__":
    key = jax.random.PRNGKey(0)

    # Case 1: canonical small shape; gamma = 0 (Scale(0) init) -> exact
    # residual. Auto-dispatch picks the fused single-pass kernel.
    B, C, H, W = 2, 4, 16, 16
    x = jax.random.normal(key, (B, C, H, W), dtype=jnp.float32)
    gamma0 = jnp.float32(0.0)
    out = jax.block_until_ready(cam_forward(x, gamma0))
    ref = cam_reference(x, gamma0)
    assert out.shape == (B, C, H, W)
    assert jnp.allclose(out, ref, atol=1e-5, rtol=1e-5)

    # Case 2: nonzero gamma, forced two-pass path with tile_n=128 so the
    # multi-tile energy accumulation runs. Tolerance covers the approximate
    # (EUP) reciprocal in the softmax normalization.
    gamma1 = jnp.float32(0.5)
    out2 = jax.block_until_ready(cam_forward(x, gamma1, tile_n=128))
    ref2 = cam_reference(x, gamma1)
    assert jnp.allclose(out2, ref2, atol=5e-3, rtol=5e-3)

    # Case 3: spatial size not a multiple of 128, fused path (full-extent block,
    # no padding copy anywhere).
    x3 = jax.random.normal(jax.random.PRNGKey(1), (2, 8, 9, 9), dtype=jnp.float32)
    gamma2 = jnp.float32(0.7)
    out3 = jax.block_until_ready(cam_forward(x3, gamma2))
    ref3 = cam_reference(x3, gamma2)
    assert jnp.allclose(out3, ref3, atol=5e-3, rtol=5e-3)

    # Case 4: forced two-pass path with a ragged final tile (N = 169, tn = 128)
    # exercises the in-kernel mask + out-of-bounds write dropping.
    x4 = jax.random.normal(jax.random.PRNGKey(2), (1, 8, 13, 13), dtype=jnp.float32)
    gamma3 = jnp.float32(0.3)
    out4 = jax.block_until_ready(cam_forward(x4, gamma3, tile_n=128, fuse=False))
    ref4 = cam_reference(x4, gamma3)
    assert jnp.allclose(out4, ref4, atol=5e-3, rtol=5e-3)

    print("KERNEL_OK")
</pallas_src>

<mosaic_0001>
module attributes {stable_mosaic.version = 11 : i64} {
  func.func @_cam_fused_kernel(%arg0: i32, %arg1: memref<1xf32, #tpu.memory_space<smem>>, %arg2: memref<1x4x256xf32, #tpu.memory_space<vmem>>, %arg3: memref<1x4x256xf32, #tpu.memory_space<vmem>>) attributes {dimension_semantics = [#tpu.dimension_semantics<parallel>], iteration_bounds = array<i64: 2>, scalar_prefetch = 1 : i64, scratch_operands = 0 : i64, tpu.core_type = #tpu.core_type<tc>, window_params = [{transform_indices = @transform_0, window_bounds = array<i64: 1, 4, 256>}, {transform_indices = @transform_1, window_bounds = array<i64: 1, 4, 256>}]} {
    %c0 = arith.constant 0 : index
    %c0_0 = arith.constant 0 : index
    %c0_1 = arith.constant 0 : index
    %0 = vector.load %arg2[%c0, %c0_0, %c0_1] : memref<1x4x256xf32, #tpu.memory_space<vmem>>, vector<1x4x256xf32>
    %1 = vector.shape_cast %0 : vector<1x4x256xf32> to vector<4x256xf32>
    %cst = arith.constant dense<0.000000e+00> : vector<4x4xf32>
    %2 = tpu.matmul %1, %1, %cst {dimension_numbers = #tpu.dot_dimension_numbers<[1], [1], [0], [0], [0, 0, 1, 0], [], []>} : vector<4x256xf32>, vector<4x256xf32>, vector<4x4xf32> -> vector<4x4xf32>
    %cst_2 = arith.constant dense<0x7F800000> : vector<4xf32>
    %3 = vector.multi_reduction <minimumf>, %2, %cst_2 [1] : vector<4x4xf32> to vector<4xf32>
    %4 = vector.shape_cast %3 : vector<4xf32> to vector<4x1xf32>
    %5 = vector.broadcast %4 : vector<4x1xf32> to vector<4x4xf32>
    %6 = arith.subf %5, %2 : vector<4x4xf32>
    %7 = math.exp %6 : vector<4x4xf32>
    %cst_3 = arith.constant dense<0.000000e+00> : vector<4xf32>
    %8 = vector.multi_reduction <add>, %7, %cst_3 [1] : vector<4x4xf32> to vector<4xf32>
    %9 = vector.shape_cast %8 : vector<4xf32> to vector<4x1xf32>
    %10 = tpu.reciprocal %9 {approx = true} : vector<4x1xf32> -> vector<4x1xf32>
    %c0_4 = arith.constant 0 : index
    %11 = memref.load %arg1[%c0_4] : memref<1xf32, #tpu.memory_space<smem>>
    %12 = vector.broadcast %10 : vector<4x1xf32> to vector<4x4xf32>
    %13 = arith.mulf %7, %12 : vector<4x4xf32>
    %14 = vector.broadcast %11 : f32 to vector<4x4xf32>
    %15 = arith.mulf %14, %13 : vector<4x4xf32>
    %cst_5 = arith.constant dense<0.000000e+00> : vector<4x256xf32>
    %16 = tpu.matmul %15, %1, %cst_5 {dimension_numbers = #tpu.dot_dimension_numbers<[1], [0], [0], [1], [0, 0, 1, 1], [], []>} : vector<4x4xf32>, vector<4x256xf32>, vector<4x256xf32> -> vector<4x256xf32>
    %17 = arith.addf %16, %1 : vector<4x256xf32>
    %c0_6 = arith.constant 0 : index
    %c0_7 = arith.constant 0 : index
    %c0_8 = arith.constant 0 : index
    %18 = vector.load %arg3[%c0_6, %c0_7, %c0_8] : memref<1x4x256xf32, #tpu.memory_space<vmem>>, vector<1x4x256xf32>
    %19 = vector.shape_cast %18 : vector<1x4x256xf32> to vector<4x256xf32>
    %20 = vector.shape_cast %17 : vector<4x256xf32> to vector<1x4x256xf32>
    tpu.vector_store %arg3[%c0_6, %c0_7, %c0_8], %20 {strides = array<i32>} : memref<1x4x256xf32, #tpu.memory_space<vmem>>, vector<1x4x256xf32>,
    return
  }
  func.func @transform_0(%arg0: i32, %arg1: memref<1xf32, #tpu.memory_space<smem>>) -> (i32, i32, i32) {
    %c0_i32 = arith.constant 0 : i32
    %c0_i32_0 = arith.constant 0 : i32
    %c0_i32_1 = arith.constant 0 : i32
    return %arg0, %c0_i32, %c0_i32_0 : i32, i32, i32
  }
  func.func @transform_1(%arg0: i32, %arg1: memref<1xf32, #tpu.memory_space<smem>>) -> (i32, i32, i32) {
    %c0_i32 = arith.constant 0 : i32
    %c0_i32_0 = arith.constant 0 : i32
    %c0_i32_1 = arith.constant 0 : i32
    return %arg0, %c0_i32, %c0_i32_0 : i32, i32, i32
  }
}

</mosaic_0001>

<bundles_post_ra>
// kernel: tpu_custom_call.1
= control target key start
LH: loop header
LB: loop body
LE: loop exit
PB: predicated region body
PF: predicated region fallthrough
CT: control target
= control target key end

     0   :  { %s749_s0 = inlined_call_operand.<no memory space> [shape: f32[1], index: 0, kind: input, shape index: {}]   ;;  %s750_s1 = inlined_call_operand.hbm [shape: f32[2,4,256], index: 1, kind: input, shape index: {}]   ;;  %s751_s2 = inlined_call_operand.hbm [shape: f32[2,4,256], index: 2, kind: output, shape index: {}]  }
   0x1   :  { %7 = sst [smem:[#allocation3]] %s749_s0 }
   0x2   :  { %8 = vsyncpa [#allocation5], 0 }
   0x3   :  { %10 = vsyncpa [#allocation5 + $0x1], 0 }
   0x4   :  { %11 = vsyncpa [#allocation6], 0 }
   0x5   :  { %13 = vsyncpa [#allocation6 + $0x1], 0  ;;  %s584_s11 = smov 0   ;;  %s586_s12 = smov 0  }
   0x6   :  { %s588_s13 = smov 0   ;;  %s590_s14 = smov 0  }
   0x7 LB: > { %s605_s0 = sadd.s32 4294967295, %s561_s14   ;;  %s394_s15 = sadd.s32 4294967294, %s561_s14   ;;  %s561_s14 = sphi %s590_s14, %s766_s14   ;;  %s557_s13 = sphi %s588_s13, %s765_s13   ;;  %s553_s12 = sphi %s586_s12, %s764_s12   ;;  %s549_s11 = sphi %s584_s11, %s763_s11  }
   0x8   : > { %s609_s16 = sadd.s32 1, %s561_s14   ;;  %s26_s17 = sadd.s32 1, %s557_s13 }
   0x9   : > { %s23_s18 = ssub.s32 %s561_s14, %s609_s16  ;;  %p33_p0 = scmp.ne.s32.totalorder %s557_s13, %s553_s12 }
   0xa   : > { %p24_p1 = scmp.eq.s32.totalorder %s23_s18, 0  ;;  %p34_p2 = scmp.eq.s32.totalorder %s561_s14, 0 }
   0xb   : > { %p39_p3 = scmp.ne.s32.totalorder %s553_s12, %s549_s11  ;;  %p40_p4 = scmp.eq.s32.totalorder %s605_s0, 0 }
   0xc   : > { %s621_s19 = scalar_select %p24_p1, %s557_s13, %s26_s17  }
   0xd   : > { %p623_p5 = por %p34_p2, %p33_p0  ;;  %p627_p6 = por %p40_p4, %p39_p3 }
   0xe   : > { %p63_p7 = scmp.eq.s32.totalorder %s605_s0, 1  ;;  %p69_p8 = scmp.eq.s32.totalorder %s394_s15, 1 }
   0xf   : > { %p425_p10 = scmp.lt.s32.totalorder %s561_s14, 2  ;;  %s89_s24 = sand.u32 1, %s557_s13  }
  0x10   : > { %p634_p11 = por %p63_p7, %p33_p0  ;;  %p638_p12 = por %p69_p8, %p39_p3 }
  0x11   : > { %s411_s25 = sshll.u32 %s561_s14, 7  ;;  %s397_s26 = sshll.u32 %s89_s24, 3 }
  0x12   : > { %s755_s22 = scalar_select %p634_p11, 1, 0 }
  0x13   : > { %s756_s23 = scalar_select %p638_p12, 1, 0 }
  0x14   : > { %s647_s29 = scalar_lea.hbm %s750_s1, %s411_s25  ;;  %s93_s30 = scalar_lea.vmem [#allocation4], %s397_s26 }
  0x15   : > { %s101_s3 = sshll.u32 %s93_s30, 4  ;;  %p651_p13 = pnand %p425_p10, %p623_p5  ;;  %s655_s3 = int_to_ptr.vmem [resolvable:$true] %s101_s3 }
  0x16   : > { %s90_s5 = scalar_lea.sflag [#allocation5], %s89_s24  ;;  %s465_s6 = scalar_lea.hbm %s647_s29, 128 }
  0x17   : > { %p466_p2 = scmp.ne.s32.totalorder %s647_s29, %s465_s6  ;;  %p467_p3 = pneg %p651_p13 }
  0x18   : > { %s470_s9 = scalar_lea.hbm %s750_s1, 256  ;;  %p471_p5 = scmp.lt.u32.totalorder %s647_s29, %s750_s1 }
  0x19   : > { %p468_p4 = pnand %p467_p3, %p466_p2  ;;  %p472_p8 = scmp.lt.u32.totalorder %s470_s9, %s465_s6 }
  0x1a   : > { %p474_p9 = scmp.lt.u32.totalorder %s465_s6, %s647_s29 }
  0x1b   : > { %p469_p7 = pneg %p468_p4  ;;  %p473_p10 = por %p472_p8, %p471_p5 }
  0x1d   : > { %p475_p0 = por %p474_p9, %p473_p10 }
  0x1f   : > { %p476_p1 = pnand %p475_p0, %p469_p7 }
  0x21   : > { %479 = shalt.err (!%p476_p1)
}
  0x22   : > { %s480_s17 = scalar_lea.vmem %s655_s3, 128  ;;  %s563_s18 = smov [#allocation4]  }
  0x23   : > { %p481_p2 = scmp.ne.s32.totalorder %s655_s3, %s480_s17  ;;  %s485_s20 = sshll.u32 %s563_s18, 4  ;;  %s486_s20 = int_to_ptr.vmem [resolvable:$false] %s485_s20 }
  0x24   : > { %s487_s24 = scalar_lea.vmem %s486_s20, 256  ;;  %p488_p11 = scmp.lt.s32.totalorder %s655_s3, %s486_s20 }
  0x25   : > { %p483_p4 = pnand %p481_p2, %p467_p3  ;;  %p489_p5 = scmp.lt.s32.totalorder %s487_s24, %s480_s17 }
  0x27   : > { %p484_p12 = pneg %p483_p4  ;;  %p490_p8 = por %p489_p5, %p488_p11 }
  0x29   : > { %p491_p9 = pnand %p490_p8, %p484_p12 }
  0x2b   : > { %494 = shalt.err (!%p491_p9)
}
  0x2c   : > { %420 = dma.hbm_to_vmem [thread:$0]  (!%p651_p13), %s647_s29, 128, %s655_s3, %s90_s5  }
  0x2d   : > { %p758_p0 = scmp.lt.s32.totalorder %s561_s14, 3  ;;  %p759_p1 = scmp.ge.s32.totalorder %s561_s14, 1 }
  0x2f   : > { %p107_p3 = pnand %p759_p1, %p758_p0 }
  0x30   : > { %s689_s25 = sand.u32 (!%p107_p3), 1, %s553_s12  }
  0x31   : > { %110 = sbr.rel (%p107_p3) target bundleno = 823 (0x337), region = 24  ;;  %s401_s26 = sshll.u32 (!%p107_p3), %s689_s25, 3 }
  0x32   : > { %s113_s27 = scalar_lea.sflag (!%p107_p3), [#allocation5], %s689_s25  ;;  %s116_s28 = scalar_lea.vmem (!%p107_p3), [#allocation4], %s401_s26 }
  0x38   : > { %540 = dma.done.wait (%p627_p6), %s113_s27, 128  }
  0x39   : > { %542 = vsyncadd (%p627_p6), %s113_s27, 4294967168  ;;  %v135_v0 = vld [vmem:[%s116_s28] sm:$0xff]  ;;  %vm209_vm0 = vcmask 27648   ;;  %vm228_vm1 = vcmask 1043456   ;;  %v564_v10 = vmov 0.0   ;;  %s220_s21 = sld [smem:[#allocation3]] }
  0x3a   : > { %v137_v1 = vcombine.high %v135_v0, %v135_v0  ;;  %297 = vmatprep.mubr.f32.mxu1 %v564_v10  ;;  %vm224_vm2 = vcmask 31744   ;;  %s412_s29 = sshll.u32 %s605_s0, 7  ;;  %s134_s30 = scalar_lea.vmem [#allocation7], %s401_s26 }
  0x3b   : > { %s324_s3 = sshll.u32 %s134_s30, 4  ;;  %s705_s6 = scalar_lea.hbm %s751_s2, %s412_s29  ;;  %s707_s3 = int_to_ptr.vmem [resolvable:$true] %s324_s3 }
  0x3c   : > { %139 = vmatprep.subr.mxu0 %v137_v1  ;;  %203 = vmatprep.mubr.f32.mxu0 %v137_v1  ;;  %s310_s7 = scalar_lea.sflag [#allocation6], %s689_s25  ;;  %s495_s8 = scalar_lea.vmem %s707_s3, 128 }
  0x3d   : > { %140 = vmatpush1.xpose.msra.mxu0 %v135_v0  ;;  %403 = vmatprep.subr.msk.mxu1 %vm228_vm1, %v137_v1  ;;  %p496_p6 = scmp.ne.s32.totalorder %s707_s3, %s495_s8  ;;  %p760_p11 = scmp.ne.s32.totalorder %s755_s22, 0 }
  0x3e   : > { %404 = vmatpush1.msk.msra.mxu1 %vm228_vm1, %v135_v0  ;;  %s565_s0 = smov [#allocation7]  }
  0x3f   : > { %v222_v13 = vstv %s220_s21  ;;  %p497_p12 = pnand %p496_p6, %p760_p11  ;;  %s499_s9 = sshll.u32 %s565_s0, 4  ;;  %s500_s9 = int_to_ptr.vmem [resolvable:$false] %s499_s9 }
  0x40   : > { %204 = vmatmul.mubr.f32.vlgmr.msra.gmra.mrb[0].mxu0 %v135_v0  ;;  %s501_s10 = scalar_lea.vmem %s500_s9, 256  ;;  %p502_p7 = scmp.lt.s32.totalorder %s707_s3, %s500_s9 }
  0x41   : > { %p498_p13 = pneg %p497_p12  ;;  %p503_p10 = scmp.lt.s32.totalorder %s501_s10, %s495_s8 }
  0x43   : > { %p504_p2 = por %p503_p10, %p502_p7 }
  0x45   : > { %p505_p4 = pnand %p504_p2, %p498_p13 }
 0x113   : > { %v205_v2 = vpop.f32.mrb[0].mxu0 }
 0x114   : > { %v207_v3 = vpop.f32.mrb[1].mxu0  ;;  %v210_v4 = vsel %vm209_vm0, %v205_v2, inf }
 0x115   : > { %211 = vmin.xlane.f32.xlu0 %v210_v4 }
 0x1a2   : > { %v212_v5 = vpop.xlane.xlu0 %211 }
 0x1a3   : > { %v213_v6 = vsub.f32 %v212_v5, %v205_v2 }
 0x1a5   : > { %v214_v7 = vmul.f32 1.442695, %v213_v6 }
 0x1a7   : > { %461 = vpow2.f32 %v214_v7 }
 0x1b1   : > { %v462_v8 = vpop.eup %461 }
 0x1b2   : > { %v216_v9 = vsel %vm209_vm0, %v462_v8, 0.0 }
 0x1b3   : > { %217 = vadd.xlane.f32.xlu0 %v216_v9 }
 0x240   : > { %v218_v11 = vpop.xlane.xlu0 %217 }
 0x241   : > { %463 = vrcp.f32 %v218_v11 }
 0x24b   : > { %v464_v12 = vpop.eup %463 }
 0x24c   : > { %v221_v14 = vmul.f32 %v464_v12, %v462_v8 }
 0x24e   : > { %v223_v15 = vmul.f32 %v222_v13, %v221_v14 }
 0x250   : > { %405 = vmatmul.mubr.msk.f32.vlgmr.msra.gmra.mrb[0].mxu1 %vm224_vm2, %v223_v15 }
 0x323   : > { %v299_v16 = vpop.f32.mrb[0].mxu1 }
 0x324   : > { %v300_v17 = vadd.f32 %v299_v16, %v135_v0  ;;  %v301_v18 = vpop.f32.mrb[1].mxu1 }
 0x325   : > { %v302_v19 = vadd.f32 %v301_v18, %v137_v1 }
 0x327   : > { %v306_v20 = vcombine.low %v300_v17, %v302_v19 }
 0x329   : > { %308 = vst [vmem:[%s134_s30] sm:$0xff] %v306_v20 }
 0x32a   : > { %508 = shalt.err (!%p505_p4)
}
 0x32b   : > { %s509_s15 = scalar_lea.hbm %s705_s6, 128  ;;  %s513_s20 = scalar_lea.hbm %s751_s2, 256 }
 0x32c   : > { %p510_p5 = scmp.ne.s32.totalorder %s705_s6, %s509_s15  ;;  %p514_p0 = scmp.lt.u32.totalorder %s705_s6, %s751_s2 }
 0x32d   : > { %p515_p1 = scmp.lt.u32.totalorder %s513_s20, %s509_s15  ;;  %p517_p6 = scmp.lt.u32.totalorder %s509_s15, %s705_s6 }
 0x32e   : > { %p511_p8 = pnand %p510_p5, %p760_p11 }
 0x32f   : > { %p516_p3 = por %p515_p1, %p514_p0 }
 0x330   : > { %p512_p9 = pneg %p511_p8 }
 0x331   : > { %p518_p12 = por %p517_p6, %p516_p3 }
 0x333   : > { %p519_p13 = pnand %p518_p12, %p512_p9 }
 0x335   : > { %522 = shalt.err (!%p519_p13)
}
 0x336   : > { %415 = dma.vmem_to_hbm [thread:$0]  (%p760_p11), %s707_s3, 128, %s705_s6, %s310_s7  }
 0x337 PF: > { %s336_s26 = sand.u32 1, %s549_s11   ;;  %p761_p7 = scmp.ne.s32.totalorder %s756_s23, 0 }
 0x338   : > { %p762_p10 = scmp.ge.s32.totalorder %s561_s14, 2  ;;  %s337_s27 = scalar_lea.sflag [#allocation6], %s336_s26 }
 0x33a   : > { %p422_p2 = pnand %p762_p10, %p761_p7 }
 0x33c   : > { %544 = dma.done.wait (!%p422_p2), %s337_s27, 128  }
 0x33d   : > { %546 = vsyncadd (!%p422_p2), %s337_s27, 4294967168  ;;  %p16_p4 = scmp.ge.s32.totalorder %s609_s16, 4   ;;  %s763_s11 = smov %s553_s12 }
 0x33e   : > { %s764_s12 = smov %s557_s13  ;;  %s765_s13 = smov %s621_s19 }
 0x33f   : > { %s766_s14 = smov %s609_s16  ;;  %18 = sbr.rel (!%p16_p4) target bundleno = 7 (0x7), region = 69 }
 0x346   :  { %342 = vsyncpa [#allocation5], 1 }
 0x347   :  { %344 = vsyncpa [#allocation5 + $0x1], 1 }
 0x348   :  { %345 = vsyncpa [#allocation6], 1 }
 0x349   :  { %347 = vsyncpa [#allocation6 + $0x1], 1 }

</bundles_post_ra>
